<compile_context>
chip_gen: v6e
topology: v6e:2x2x1
jax: 0.10.0
libtpu: 0.0.40
codegen_flags: <defaults>
</compile_context>

<pallas_src>
import functools

import jax
import jax.numpy as jnp
from jax import lax
from jax.experimental import pallas as pl
from jax.experimental.pallas import tpu as pltpu


# ---------------------------------------------------------------------------
# Kernel
# ---------------------------------------------------------------------------
def channel_attention_kernel(x_ref, w1t_ref, w2t_ref, o_ref, sum_sc, max_sc,
                             *, hw_total, chunk_hw, num_chunks):
    """One (batch-block, HW-block) grid step of the CBAM channel branch.

    x_ref  : (block_n, C, block_hw) VMEM, lane-dense flattened spatial slice
    w1t_ref: (C, Ch)   VMEM, fc1 weight pre-transposed
    w2t_ref: (Ch, C)   VMEM, fc2 weight pre-transposed
    o_ref  : (block_n, C) VMEM (leading grid dim squeezed)
    sum_sc : (block_n, C) f32 scratch -- running sum across HW grid steps
    max_sc : (block_n, C) f32 scratch -- running max across HW grid steps
    """
    k = pl.program_id(1)
    nb, c_dim, _ = x_ref.shape

    @pl.when(k == 0)
    def _():
        sum_sc[...] = jnp.zeros_like(sum_sc)
        max_sc[...] = jnp.full_like(max_sc, -jnp.inf)

    # --- fused single-pass pooling over this HW block -----------------------
    # One streaming pass over the block's vregs: sum accumulates in f32,
    # max stays in the raw dtype (exact in bf16/f32), so the block is only
    # read from VMEM once.
    if num_chunks == 1:
        xb = x_ref[...]
        part_sum = jnp.sum(xb.astype(jnp.float32), axis=-1)         # (nb, C)
        part_max = jnp.max(xb, axis=-1)                             # (nb, C)
    else:
        def body(j, carry):
            s, m = carry
            off = pl.multiple_of(j * chunk_hw, chunk_hw)
            xc = x_ref[:, :, pl.ds(off, chunk_hw)]                  # raw dtype
            s = s + jnp.sum(xc.astype(jnp.float32), axis=-1)
            m = jnp.maximum(m, jnp.max(xc, axis=-1))
            return s, m

        s0 = jnp.zeros((nb, c_dim), jnp.float32)
        m0 = jnp.full((nb, c_dim), -jnp.inf, x_ref.dtype)
        part_sum, part_max = lax.fori_loop(0, num_chunks, body, (s0, m0),
                                           unroll=(num_chunks <= 8))

    sum_sc[...] = sum_sc[...] + part_sum
    max_sc[...] = jnp.maximum(max_sc[...], part_max.astype(jnp.float32))

    # --- finalize: shared MLP + sigmoid on the pooled vectors ---------------
    @pl.when(k == pl.num_programs(1) - 1)
    def _():
        avg_c = sum_sc[...] * jnp.float32(1.0 / hw_total)            # (nb, C)
        pooled = jnp.concatenate([avg_c, max_sc[...]], axis=0)       # (2nb, C)
        h = jnp.maximum(
            jnp.dot(pooled, w1t_ref[...].astype(jnp.float32),
                    preferred_element_type=jnp.float32), 0.0)        # (2nb, Ch)
        mlp_out = jnp.dot(h, w2t_ref[...].astype(jnp.float32),
                          preferred_element_type=jnp.float32)        # (2nb, C)
        ca = jax.nn.sigmoid(mlp_out[:nb] + mlp_out[nb:])             # (nb, C)
        o_ref[...] = ca.astype(o_ref.dtype)


# ---------------------------------------------------------------------------
# Block-size / hardware helpers
# ---------------------------------------------------------------------------
def _tpu_vmem_and_cores():
    """Best-effort query of per-core VMEM bytes and TensorCores per chip."""
    vmem_cap = 64 * 1024 * 1024  # conservative default (v7x per-TC VMEM)
    n_cores = 1
    try:
        info = pltpu.get_tpu_info()
        vmem_cap = int(getattr(info, "vmem_capacity_bytes", vmem_cap))
        for attr in ("num_cores", "core_count", "tensorcore_count",
                     "num_tensorcores"):
            v = getattr(info, attr, None)
            if isinstance(v, int) and v > 0:
                n_cores = v
                break
    except Exception:
        pass
    return vmem_cap, n_cores


def _largest_divisor_leq(n, cap):
    cap = max(1, min(cap, n))
    for d in range(cap, 0, -1):
        if n % d == 0:
            return d
    return 1


def _pick_blocks(n, c, hw, itemsize, budget_bytes, n_cores):
    """Pick (block_n, block_hw) so the double-buffered x tile fits the VMEM
    byte budget. Prefer whole samples per block; tile HW only when a single
    sample's (C, HW) slab is too large."""
    per_sample = c * hw * itemsize
    if 2 * per_sample <= budget_bytes:
        cap_n = max(budget_bytes // (2 * per_sample), 1)
        # On multi-TensorCore chips keep >= n_cores steps on the parallel
        # (batch) axis when possible so every core gets work.
        if n_cores > 1 and n >= n_cores:
            cap_n = min(cap_n, n // n_cores)
        return _largest_divisor_leq(n, cap_n), hw
    # Single sample too big: block_n = 1 and tile the flattened spatial axis
    # in 128-lane multiples; the kernel accumulates (sum, max) across steps.
    cap_hw = max(budget_bytes // (2 * c * itemsize), 128)
    d = (cap_hw // 128) * 128
    while d >= 128:
        if hw % d == 0:
            return 1, d
        d -= 128
    return 1, hw  # HW has no 128-multiple divisor; take the whole row.


def _pick_chunk(block_hw):
    """Chunk width for the fused in-kernel pooling pass."""
    for c in (1024, 512, 256, 128):
        if block_hw > c and block_hw % c == 0:
            return c, block_hw // c
    return block_hw, 1


# ---------------------------------------------------------------------------
# Wrapper
# ---------------------------------------------------------------------------
def channel_attention(x, w1, w2, *, block_n=None, block_hw=None,
                      input_dtype=None):
    """CBAM channel attention forward.

    x : (N, C, H, W);  w1 : (C//r, C) fc1 weight;  w2 : (C, C//r) fc2 weight.
    Returns (N, C, 1, 1) attention weights in x.dtype.

    input_dtype: optionally cast the streamed activations (e.g. jnp.bfloat16)
    to halve HBM traffic; pooling still accumulates in f32.
    """
    N, C, H, W = x.shape
    Ch = w1.shape[0]
    assert w1.shape == (Ch, C) and w2.shape == (C, Ch)
    HW = H * W
    out_dtype = x.dtype

    # Lane-dense view: flattened spatial dim on the lane axis.
    x_flat = x.reshape(N, C, HW)
    if input_dtype is not None:
        x_flat = x_flat.astype(input_dtype)
    w1t = jnp.transpose(w1)  # (C, Ch)
    w2t = jnp.transpose(w2)  # (Ch, C)

    itemsize = x_flat.dtype.itemsize
    vmem_cap, n_cores = _tpu_vmem_and_cores()
    budget = (vmem_cap * 3) // 4  # headroom for weights/output/scratch

    auto_n, auto_hw = _pick_blocks(N, C, HW, itemsize, budget, n_cores)
    if block_n is None:
        block_n = auto_n
    if block_hw is None:
        block_hw = auto_hw
    assert N % block_n == 0
    assert HW % block_hw == 0
    assert block_hw == HW or block_hw % 128 == 0, \
        "HW tiles must be 128-lane multiples (or the full spatial extent)"
    grid_n = N // block_n
    grid_hw = HW // block_hw
    chunk_hw, num_chunks = _pick_chunk(block_hw)

    # Explicit scoped-VMEM limit: 2x (double buffering) for every streamed
    # tile plus scratch and slack, clipped to physical capacity.
    x_block_bytes = block_n * C * block_hw * itemsize
    w_bytes = 2 * C * Ch * w1t.dtype.itemsize
    out_block_bytes = block_n * C * jnp.dtype(out_dtype).itemsize
    scratch_bytes = 2 * block_n * C * 4
    needed = 2 * (x_block_bytes + w_bytes + out_block_bytes) + scratch_bytes
    vmem_limit = int(min(max(needed + (4 << 20), 32 << 20), vmem_cap))

    cost = pl.CostEstimate(
        flops=2 * N * C * HW + 8 * N * C * Ch,
        transcendentals=N * C,
        bytes_accessed=(N * C * HW * itemsize + w_bytes
                        + N * C * jnp.dtype(out_dtype).itemsize),
    )

    kernel = functools.partial(channel_attention_kernel, hw_total=HW,
                               chunk_hw=chunk_hw, num_chunks=num_chunks)

    # TODO(synk): if batch <= 2 on v7x, a leading parallel split of HW (partial
    # pooling per core + tiny combine step) would keep both TensorCores busy.
    out2d = pl.pallas_call(
        kernel,
        out_shape=jax.ShapeDtypeStruct((grid_n, block_n, C), out_dtype),
        grid_spec=pltpu.PrefetchScalarGridSpec(
            num_scalar_prefetch=0,
            grid=(grid_n, grid_hw),
            in_specs=[
                pl.BlockSpec((block_n, C, block_hw), lambda i, k: (i, 0, k)),
                pl.BlockSpec((C, Ch), lambda i, k: (0, 0)),
                pl.BlockSpec((Ch, C), lambda i, k: (0, 0)),
            ],
            out_specs=pl.BlockSpec((None, block_n, C), lambda i, k: (i, 0, 0)),
            scratch_shapes=[
                pltpu.VMEM((block_n, C), jnp.float32),   # running sum
                pltpu.VMEM((block_n, C), jnp.float32),   # running max
            ],
        ),
        compiler_params=pltpu.CompilerParams(
            dimension_semantics=("parallel", "arbitrary"),
            vmem_limit_bytes=vmem_limit),
        cost_estimate=cost,
    )(x_flat, w1t, w2t)

    return out2d.reshape(N, C, 1, 1)


# ---------------------------------------------------------------------------
# Pure-JAX reference (matches the PyTorch ChannelAttention forward)
# ---------------------------------------------------------------------------
def channel_attention_reference(x, w1, w2):
    avg = jnp.mean(x, axis=(2, 3))   # (N, C)
    mx = jnp.max(x, axis=(2, 3))     # (N, C)

    def mlp(v):                      # fc1 (1x1 conv) -> ReLU -> fc2 (1x1 conv)
        h = jnp.maximum(v @ w1.T, 0.0)
        return h @ w2.T

    out = jax.nn.sigmoid(mlp(avg) + mlp(mx))
    return out[:, :, None, None]     # (N, C, 1, 1)


if __name__ == "__main__":
    # in_planes must be >= ratio(=16) for a non-degenerate hidden layer.
    N, C, H, W = 2, 32, 16, 16
    ratio = 16
    Ch = C // ratio  # 2

    key = jax.random.PRNGKey(0)
    kx, k1, k2 = jax.random.split(key, 3)
    x = jax.random.normal(kx, (N, C, H, W), dtype=jnp.float32)
    # fc1: Conv2d(C, C//r, 1, bias=False) -> weight (C//r, C)
    w1 = jax.random.normal(k1, (Ch, C), dtype=jnp.float32) * 0.2
    # fc2: Conv2d(C//r, C, 1, bias=False) -> weight (C, C//r)
    w2 = jax.random.normal(k2, (C, Ch), dtype=jnp.float32) * 0.2

    ref = channel_attention_reference(x, w1, w2)

    # 1) Auto-tiled, f32 activations.
    out = jax.block_until_ready(channel_attention(x, w1, w2))
    assert out.shape == (N, C, 1, 1)
    assert jnp.allclose(out, ref, rtol=1e-5, atol=1e-5), "mismatch (auto)"

    # 2) HW-tiled path (exercises the k-axis running-sum/max accumulators).
    out_tiled = jax.block_until_ready(
        channel_attention(x, w1, w2, block_n=1, block_hw=128))
    assert jnp.allclose(out_tiled, ref, rtol=1e-5, atol=1e-5), "mismatch (tiled)"

    # 3) bf16-streamed activations (halved HBM traffic; looser tolerance).
    out_bf16 = jax.block_until_ready(
        channel_attention(x, w1, w2, input_dtype=jnp.bfloat16))
    assert jnp.allclose(out_bf16.astype(jnp.float32), ref,
                        rtol=2e-2, atol=2e-2), "mismatch (bf16)"

    print("KERNEL_OK")
</pallas_src>

<mosaic_0001>
module attributes {stable_mosaic.version = 11 : i64} {
  func.func @channel_attention_kernel(%arg0: i32, %arg1: i32, %arg2: memref<2x32x256xf32, #tpu.memory_space<vmem>>, %arg3: memref<32x2xf32, #tpu.memory_space<vmem>>, %arg4: memref<2x32xf32, #tpu.memory_space<vmem>>, %arg5: memref<1x2x32xf32, #tpu.memory_space<vmem>>, %arg6: memref<2x32xf32, #tpu.memory_space<vmem>>, %arg7: memref<2x32xf32, #tpu.memory_space<vmem>>) attributes {dimension_semantics = [#tpu.dimension_semantics<parallel>, #tpu.dimension_semantics<arbitrary>], iteration_bounds = array<i64: 1, 1>, scalar_prefetch = 0 : i64, scratch_operands = 2 : i64, tpu.core_type = #tpu.core_type<tc>, window_params = [{transform_indices = @transform_0, window_bounds = array<i64: 2, 32, 256>}, {pipeline_mode = #tpu.pipeline_mode<synchronous>, transform_indices = @transform_1, window_bounds = array<i64: 32, 2>}, {pipeline_mode = #tpu.pipeline_mode<synchronous>, transform_indices = @transform_2, window_bounds = array<i64: 2, 32>}, {transform_indices = @transform_3, window_bounds = array<i64: 1, 2, 32>}]} {
    %c0_i32 = arith.constant 0 : i32
    %0 = arith.cmpi eq, %arg1, %c0_i32 : i32
    %1 = arith.extui %0 : i1 to i32
    %c0_i32_0 = arith.constant 0 : i32
    %2 = arith.cmpi ne, %1, %c0_i32_0 : i32
    scf.if %2 {
      %cst_21 = arith.constant 0.000000e+00 : f32
      %30 = vector.broadcast %cst_21 : f32 to vector<2x32xf32>
      %c0_22 = arith.constant 0 : index
      %c0_23 = arith.constant 0 : index
      %31 = vector.load %arg6[%c0_22, %c0_23] : memref<2x32xf32, #tpu.memory_space<vmem>>, vector<2x32xf32>
      tpu.vector_store %arg6[%c0_22, %c0_23], %30 {strides = array<i32>} : memref<2x32xf32, #tpu.memory_space<vmem>>, vector<2x32xf32>,
      %cst_24 = arith.constant 0xFF800000 : f32
      %32 = vector.broadcast %cst_24 : f32 to vector<2x32xf32>
      %c0_25 = arith.constant 0 : index
      %c0_26 = arith.constant 0 : index
      %33 = vector.load %arg7[%c0_25, %c0_26] : memref<2x32xf32, #tpu.memory_space<vmem>>, vector<2x32xf32>
      tpu.vector_store %arg7[%c0_25, %c0_26], %32 {strides = array<i32>} : memref<2x32xf32, #tpu.memory_space<vmem>>, vector<2x32xf32>,
    } else {
    }
    %cst = arith.constant 0.000000e+00 : f32
    %3 = vector.broadcast %cst : f32 to vector<2x32xf32>
    %cst_1 = arith.constant 0xFF800000 : f32
    %4 = vector.broadcast %cst_1 : f32 to vector<2x32xf32>
    %c0_i32_2 = arith.constant 0 : i32
    %c128_i32 = arith.constant 128 : i32
    %5 = arith.muli %c0_i32_2, %c128_i32 : i32
    %6 = tpu.assume_multiple %5, 128 : i32
    %c0 = arith.constant 0 : index
    %c0_3 = arith.constant 0 : index
    %7 = arith.index_cast %6 : i32 to index
    %8 = vector.load %arg2[%c0, %c0_3, %7] : memref<2x32x256xf32, #tpu.memory_space<vmem>>, vector<2x32x128xf32>
    %cst_4 = arith.constant dense<0.000000e+00> : vector<2x32xf32>
    %9 = vector.multi_reduction <add>, %8, %cst_4 [2] : vector<2x32x128xf32> to vector<2x32xf32>
    %10 = arith.addf %3, %9 : vector<2x32xf32>
    %cst_5 = arith.constant dense<0xFF800000> : vector<2x32xf32>
    %11 = vector.multi_reduction <maximumf>, %8, %cst_5 [2] : vector<2x32x128xf32> to vector<2x32xf32>
    %12 = arith.maximumf %4, %11 : vector<2x32xf32>
    %c1_i32 = arith.constant 1 : i32
    %c128_i32_6 = arith.constant 128 : i32
    %13 = arith.muli %c1_i32, %c128_i32_6 : i32
    %14 = tpu.assume_multiple %13, 128 : i32
    %c0_7 = arith.constant 0 : index
    %c0_8 = arith.constant 0 : index
    %15 = arith.index_cast %14 : i32 to index
    %16 = vector.load %arg2[%c0_7, %c0_8, %15] : memref<2x32x256xf32, #tpu.memory_space<vmem>>, vector<2x32x128xf32>
    %cst_9 = arith.constant dense<0.000000e+00> : vector<2x32xf32>
    %17 = vector.multi_reduction <add>, %16, %cst_9 [2] : vector<2x32x128xf32> to vector<2x32xf32>
    %18 = arith.addf %10, %17 : vector<2x32xf32>
    %cst_10 = arith.constant dense<0xFF800000> : vector<2x32xf32>
    %19 = vector.multi_reduction <maximumf>, %16, %cst_10 [2] : vector<2x32x128xf32> to vector<2x32xf32>
    %20 = arith.maximumf %12, %19 : vector<2x32xf32>
    %c2_i32 = arith.constant 2 : i32
    %c0_11 = arith.constant 0 : index
    %c0_12 = arith.constant 0 : index
    %21 = vector.load %arg6[%c0_11, %c0_12] : memref<2x32xf32, #tpu.memory_space<vmem>>, vector<2x32xf32>
    %22 = arith.addf %21, %18 : vector<2x32xf32>
    %c0_13 = arith.constant 0 : index
    %c0_14 = arith.constant 0 : index
    %23 = vector.load %arg6[%c0_13, %c0_14] : memref<2x32xf32, #tpu.memory_space<vmem>>, vector<2x32xf32>
    tpu.vector_store %arg6[%c0_13, %c0_14], %22 {strides = array<i32>} : memref<2x32xf32, #tpu.memory_space<vmem>>, vector<2x32xf32>,
    %c0_15 = arith.constant 0 : index
    %c0_16 = arith.constant 0 : index
    %24 = vector.load %arg7[%c0_15, %c0_16] : memref<2x32xf32, #tpu.memory_space<vmem>>, vector<2x32xf32>
    %25 = arith.maximumf %24, %20 : vector<2x32xf32>
    %c0_17 = arith.constant 0 : index
    %c0_18 = arith.constant 0 : index
    %26 = vector.load %arg7[%c0_17, %c0_18] : memref<2x32xf32, #tpu.memory_space<vmem>>, vector<2x32xf32>
    tpu.vector_store %arg7[%c0_17, %c0_18], %25 {strides = array<i32>} : memref<2x32xf32, #tpu.memory_space<vmem>>, vector<2x32xf32>,
    %c0_i32_19 = arith.constant 0 : i32
    %27 = arith.cmpi eq, %arg1, %c0_i32_19 : i32
    %28 = arith.extui %27 : i1 to i32
    %c0_i32_20 = arith.constant 0 : i32
    %29 = arith.cmpi ne, %28, %c0_i32_20 : i32
    scf.if %29 {
      %c0_21 = arith.constant 0 : index
      %c0_22 = arith.constant 0 : index
      %30 = vector.load %arg6[%c0_21, %c0_22] : memref<2x32xf32, #tpu.memory_space<vmem>>, vector<2x32xf32>
      %cst_23 = arith.constant 3.906250e-03 : f32
      %31 = vector.broadcast %cst_23 : f32 to vector<2x32xf32>
      %32 = arith.mulf %30, %31 : vector<2x32xf32>
      %c0_24 = arith.constant 0 : index
      %c0_25 = arith.constant 0 : index
      %33 = vector.load %arg7[%c0_24, %c0_25] : memref<2x32xf32, #tpu.memory_space<vmem>>, vector<2x32xf32>
      %34 = tpu.concatenate %32, %33 in 0 : vector<2x32xf32>, vector<2x32xf32> -> vector<4x32xf32>
      %c0_26 = arith.constant 0 : index
      %c0_27 = arith.constant 0 : index
      %35 = vector.load %arg3[%c0_26, %c0_27] : memref<32x2xf32, #tpu.memory_space<vmem>>, vector<32x2xf32>
      %cst_28 = arith.constant dense<0.000000e+00> : vector<4x2xf32>
      %36 = tpu.matmul %34, %35, %cst_28 {dimension_numbers = #tpu.dot_dimension_numbers<[1], [0], [0], [1], [0, 0, 1, 1], [], []>} : vector<4x32xf32>, vector<32x2xf32>, vector<4x2xf32> -> vector<4x2xf32>
      %cst_29 = arith.constant 0.000000e+00 : f32
      %37 = vector.broadcast %cst_29 : f32 to vector<4x2xf32>
      %38 = arith.maximumf %36, %37 : vector<4x2xf32>
      %c0_30 = arith.constant 0 : index
      %c0_31 = arith.constant 0 : index
      %39 = vector.load %arg4[%c0_30, %c0_31] : memref<2x32xf32, #tpu.memory_space<vmem>>, vector<2x32xf32>
      %cst_32 = arith.constant dense<0.000000e+00> : vector<4x32xf32>
      %40 = tpu.matmul %38, %39, %cst_32 {dimension_numbers = #tpu.dot_dimension_numbers<[1], [0], [0], [1], [0, 0, 1, 1], [], []>} : vector<4x2xf32>, vector<2x32xf32>, vector<4x32xf32> -> vector<4x32xf32>
      %41 = vector.extract_strided_slice %40 {offsets = [0, 0], sizes = [2, 32], strides = [1, 1]} : vector<4x32xf32> to vector<2x32xf32>
      %42 = vector.extract_strided_slice %40 {offsets = [2, 0], sizes = [2, 32], strides = [1, 1]} : vector<4x32xf32> to vector<2x32xf32>
      %43 = arith.addf %41, %42 : vector<2x32xf32>
      %44 = arith.negf %43 : vector<2x32xf32>
      %45 = math.exp %44 : vector<2x32xf32>
      %cst_33 = arith.constant 1.000000e+00 : f32
      %46 = vector.broadcast %cst_33 : f32 to vector<2x32xf32>
      %47 = arith.addf %46, %45 : vector<2x32xf32>
      %48 = arith.divf %46, %47 : vector<2x32xf32>
      %c0_34 = arith.constant 0 : index
      %c0_35 = arith.constant 0 : index
      %c0_36 = arith.constant 0 : index
      %49 = vector.load %arg5[%c0_34, %c0_35, %c0_36] : memref<1x2x32xf32, #tpu.memory_space<vmem>>, vector<1x2x32xf32>
      %50 = vector.shape_cast %49 : vector<1x2x32xf32> to vector<2x32xf32>
      %51 = vector.shape_cast %48 : vector<2x32xf32> to vector<1x2x32xf32>
      tpu.vector_store %arg5[%c0_34, %c0_35, %c0_36], %51 {strides = array<i32>} : memref<1x2x32xf32, #tpu.memory_space<vmem>>, vector<1x2x32xf32>,
    } else {
    }
    return
  }
  func.func @transform_0(%arg0: i32, %arg1: i32) -> (i32, i32, i32) {
    %c0_i32 = arith.constant 0 : i32
    %c0_i32_0 = arith.constant 0 : i32
    return %arg0, %c0_i32, %arg1 : i32, i32, i32
  }
  func.func @transform_1(%arg0: i32, %arg1: i32) -> (i32, i32) {
    %c0_i32 = arith.constant 0 : i32
    %c0_i32_0 = arith.constant 0 : i32
    %c0_i32_1 = arith.constant 0 : i32
    return %c0_i32, %c0_i32_0 : i32, i32
  }
  func.func @transform_2(%arg0: i32, %arg1: i32) -> (i32, i32) {
    %c0_i32 = arith.constant 0 : i32
    %c0_i32_0 = arith.constant 0 : i32
    %c0_i32_1 = arith.constant 0 : i32
    return %c0_i32, %c0_i32_0 : i32, i32
  }
  func.func @transform_3(%arg0: i32, %arg1: i32) -> (i32, i32, i32) {
    %c0_i32 = arith.constant 0 : i32
    %c0_i32_0 = arith.constant 0 : i32
    %c0_i32_1 = arith.constant 0 : i32
    return %arg0, %c0_i32, %c0_i32_0 : i32, i32, i32
  }
}

</mosaic_0001>

<bundles_post_ra>
// kernel: tpu_custom_call.1
= control target key start
LH: loop header
LB: loop body
LE: loop exit
PB: predicated region body
PF: predicated region fallthrough
CT: control target
= control target key end

     0   :  { %8 = vsyncpa [#allocation5], 0  ;;  %s608_s0 = inlined_call_operand.hbm [shape: f32[2,32,256], index: 0, kind: input, shape index: {}]   ;;  %s609_s1 = inlined_call_operand.vmem [shape: f32[32,2], index: 1, kind: input, shape index: {}]   ;;  %s610_s2 = inlined_call_operand.vmem [shape: f32[2,32], index: 2, kind: input, shape index: {}]   ;;  %s611_s3 = inlined_call_operand.hbm [shape: f32[1,2,32], index: 3, kind: output, shape index: {}]  }
   0x1   :  { %9 = vsyncpa [#allocation6], 0  ;;  %s529_s12 = smov [#allocation4]  }
   0x2   :  { %s15_s13 = sshll.u32 %s529_s12, 4  ;;  %s16_s13 = int_to_ptr.vmem [resolvable:$true] %s15_s13 }
   0x3   :  { %s493_s14 = scalar_lea.vmem %s16_s13, 2048  ;;  %p498_p1 = scmp.lt.s32.totalorder %s16_s13, %s16_s13 }
   0x4   :  { %p494_p0 = scmp.ne.s32.totalorder %s16_s13, %s493_s14  ;;  %p499_p2 = scmp.lt.s32.totalorder %s493_s14, %s493_s14 }
   0x6   :  { %p500_p3 = por %p499_p2, %p498_p1 }
   0x8   :  { %p501_p4 = pnand %p500_p3, %p494_p0 }
   0xa   :  { %504 = shalt.err (!%p501_p4)
}
   0xb   :  { %s530_s15 = smov 256   ;;  %s531_s16 = smov 16  }
   0xc   :  { %21 = dma.hbm_to_vmem [thread:$0]  %s608_s0, 2048, %s16_s13, [#allocation5], %s530_s15, %s530_s15, %s531_s16  }
   0xd   :  { %525 = dma.done.wait [#allocation5], 2048  }
   0xe   :  { %526 = vsyncadd [#allocation5], 4294965248  ;;  %v40_v0 = vld [vmem:[#allocation4 + $0x40] sm:$0xff]  ;;  %v41_v2 = vld [vmem:[#allocation4 + $0x50] sm:$0xff]  ;;  %vm33_vm0 = vcmask 254976   ;;  %v532_v16 = vmov 0.0   ;;  %v150_v42 = vlaneseq }
   0xf   :  { %v36_v1 = vld [vmem:[#allocation4] sm:$0xff]  ;;  %52 = vadd.xlane.f32.xlu1 %v40_v0  ;;  %v37_v3 = vld [vmem:[#allocation4 + $0x10] sm:$0xff]  ;;  %v86_v4 = vld [vmem:[#allocation4 + $0x18] sm:$0xff]  ;;  %34 = vst.msk [vmem:[#allocation2] sm:$0x3] %vm33_vm0, %v532_v16  ;;  %458 = vmatprep.subr.mxu0 %v532_v16  ;;  %v533_v17 = vmov -inf  }
  0x10   :  { %44 = vadd.xlane.f32.xlu0 %v36_v1  ;;  %v85_v5 = vld [vmem:[#allocation4 + $0x8] sm:$0xff]  ;;  %v90_v6 = vld [vmem:[#allocation4 + $0x58] sm:$0xff]  ;;  %v42_v8 = vld [vmem:[#allocation4 + $0x60] sm:$0xff]  ;;  %469 = vmatprep.subr.mxu1 %v532_v16  ;;  %35 = vst.msk [vmem:[#allocation3] sm:$0x3] %vm33_vm0, %v533_v17  ;;  %vm534_vm1 = vmmov 0  }
  0x11   :  { %v89_v7 = vld [vmem:[#allocation4 + $0x48] sm:$0xff]  ;;  %v38_v9 = vld [vmem:[#allocation4 + $0x20] sm:$0xff]  ;;  %v43_v12 = vld [vmem:[#allocation4 + $0x70] sm:$0xff]  ;;  %466 = vmatprep.mubr.msk.f32.mxu0 %vm534_vm1, %v532_v16  ;;  %471 = vmatprep.mubr.msk.f32.mxu1 %vm534_vm1, %v532_v16  ;;  %v151_v45 = vand.u32 127, %v150_v42  ;;  %v153_v48 = vshrl.u32 %v150_v42, 7  ;;  %vm161_vm2 = vcmask 130112  }
  0x12   :  { %v91_v10 = vld [vmem:[#allocation4 + $0x68] sm:$0xff]  ;;  %v39_v13 = vld [vmem:[#allocation4 + $0x30] sm:$0xff]  ;;  %v92_v14 = vld [vmem:[#allocation4 + $0x78] sm:$0xff]  ;;  %vm168_vm3 = vcmask 195712   ;;  %vm175_vm4 = vcmask 261312   ;;  %vm196_vm5 = vcmask 1041409  }
  0x13   :  { %54 = vadd.xlane.f32.xlu1 %v41_v2  ;;  %v87_v11 = vld [vmem:[#allocation4 + $0x28] sm:$0xff]  ;;  %v88_v15 = vld [vmem:[#allocation4 + $0x38] sm:$0xff]  ;;  %v156_v49 = vadd.s32 4294967288, %v151_v45  ;;  %v163_v50 = vadd.s32 4294967280, %v151_v45  ;;  %v154_v55 = vsub.s32 %v151_v45, %v153_v48  ;;  %v170_v59 = vadd.s32 4294967272, %v151_v45  ;;  %s535_s27 = smov [#allocation7]  }
  0x14   :  { %46 = vadd.xlane.f32.xlu0 %v37_v3  ;;  %v267_v18 = vld [vmem:[%s609_s1 + $0x18] sm:$0xff]  ;;  %v266_v19 = vld [vmem:[%s609_s1 + $0x10] sm:$0xff]  ;;  %v265_v20 = vld [vmem:[%s609_s1 + $0x8] sm:$0xff]  ;;  %vm262_vm6 = vcmask 1041408   ;;  %vm268_vm7 = vcmask 261120   ;;  %vm344_vm8 = vcmask 15360  }
  0x15   :  { %459 = vmatpush3.msra.mxu0 %v267_v18  ;;  %v264_v21 = vld [vmem:[%s609_s1] sm:$0xff]  ;;  %v159_v53 = vsub.s32 %v156_v49, %v153_v48  ;;  %v166_v60 = vsub.s32 %v163_v50, %v153_v48  ;;  %s438_s28 = sshll.u32 %s535_s27, 4  ;;  %s439_s28 = int_to_ptr.vmem [resolvable:$true] %s438_s28 }
  0x16   :  { %460 = vmatprep.subr.mxu0 %v532_v16  ;;  %p510_p6 = scmp.lt.s32.totalorder %s439_s28, %s439_s28 }
  0x17   :  { %70 = vmax.xlane.f32.xlu1 %v37_v3  ;;  %461 = vmatpush3.msra.mxu0 %v266_v19  ;;  %v202_v45 = vld [vmem:[#allocation3] sm:$0x3] }
  0x18   :  { %68 = vmax.xlane.f32.xlu0 %v36_v1  ;;  %462 = vmatprep.subr.mxu0 %v532_v16 }
  0x19   :  { %463 = vmatpush3.msra.mxu0 %v265_v20 }
  0x1a   :  { %464 = vmatprep.subr.mxu0 %v532_v16 }
  0x1b   :  { %78 = vmax.xlane.f32.xlu1 %v41_v2  ;;  %465 = vmatpush3.msra.mxu0 %v264_v21 }
  0x1c   :  { %76 = vmax.xlane.f32.xlu0 %v40_v0 }
  0x1f   :  { %95 = vadd.xlane.f32.xlu1 %v86_v4 }
  0x20   :  { %93 = vadd.xlane.f32.xlu0 %v85_v5 }
  0x23   :  { %103 = vadd.xlane.f32.xlu1 %v90_v6 }
  0x24   :  { %101 = vadd.xlane.f32.xlu0 %v89_v7 }
  0x27   :  { %119 = vmax.xlane.f32.xlu1 %v86_v4 }
  0x28   :  { %117 = vmax.xlane.f32.xlu0 %v85_v5 }
  0x2b   :  { %127 = vmax.xlane.f32.xlu1 %v90_v6 }
  0x2c   :  { %125 = vmax.xlane.f32.xlu0 %v89_v7 }
  0x2f   :  { %56 = vadd.xlane.f32.xlu1 %v42_v8 }
  0x30   :  { %48 = vadd.xlane.f32.xlu0 %v38_v9 }
  0x33   :  { %80 = vmax.xlane.f32.xlu1 %v42_v8 }
  0x34   :  { %72 = vmax.xlane.f32.xlu0 %v38_v9  ;;  %v173_v9 = vsub.s32 %v170_v59, %v153_v48 }
  0x37   :  { %105 = vadd.xlane.f32.xlu1 %v91_v10 }
  0x38   :  { %97 = vadd.xlane.f32.xlu0 %v87_v11 }
  0x3b   :  { %129 = vmax.xlane.f32.xlu1 %v91_v10 }
  0x3c   :  { %121 = vmax.xlane.f32.xlu0 %v87_v11 }
  0x3f   :  { %58 = vadd.xlane.f32.xlu1 %v43_v12 }
  0x40   :  { %50 = vadd.xlane.f32.xlu0 %v39_v13 }
  0x43   :  { %82 = vmax.xlane.f32.xlu1 %v43_v12 }
  0x44   :  { %74 = vmax.xlane.f32.xlu0 %v39_v13 }
  0x47   :  { %107 = vadd.xlane.f32.xlu1 %v92_v14 }
  0x48   :  { %99 = vadd.xlane.f32.xlu0 %v88_v15 }
  0x4b   :  { %131 = vmax.xlane.f32.xlu1 %v92_v14 }
  0x4c   :  { %123 = vmax.xlane.f32.xlu0 %v88_v15 }
  0x98   :  { %v53_v22 = vpop.xlane.xlu1 %52 }
  0x99   :  { %v45_v23 = vpop.xlane.xlu0 %44 }
  0x9c   :  { %v55_v24 = vpop.xlane.xlu1 %54 }
  0x9d   :  { %v47_v25 = vpop.xlane.xlu0 %46 }
  0xa0   :  { %v573_v26 = vpop.xlane.xlu1 %70 }
  0xa1   :  { %v575_v27 = vpop.xlane.xlu0 %68 }
  0xa4   :  { %v577_v28 = vpop.xlane.xlu1 %78 }
  0xa5   :  { %v579_v29 = vpop.xlane.xlu0 %76 }
  0xa8   :  { %v96_v30 = vpop.xlane.xlu1 %95 }
  0xa9   :  { %v94_v31 = vpop.xlane.xlu0 %93  ;;  %v110_v54 = vadd.f32 %v96_v30, %v47_v25  ;;  %v141_v30 = vld [vmem:[#allocation2] sm:$0x3] }
  0xaa   :  { %v109_v56 = vadd.f32 %v94_v31, %v45_v23 }
  0xab   :  { %v160_v1 = vrot.slane %v110_v54, %v159_v53 }
  0xac   :  { %v104_v32 = vpop.xlane.xlu1 %103  ;;  %v155_v2 = vrot.slane %v109_v56, %v154_v55 }
  0xad   :  { %v102_v33 = vpop.xlane.xlu0 %101  ;;  %v114_v57 = vadd.f32 %v104_v32, %v55_v24 }
  0xae   :  { %v113_v58 = vadd.f32 %v102_v33, %v53_v22  ;;  %v162_v18 = vsel %vm161_vm2, %v160_v1, %v155_v2 }
  0xaf   :  { %v184_v3 = vrot.slane %v114_v57, %v159_v53 }
  0xb0   :  { %v120_v34 = vpop.xlane.xlu1 %119  ;;  %v180_v4 = vrot.slane %v113_v58, %v154_v55 }
  0xb1   :  { %v118_v35 = vpop.xlane.xlu0 %117  ;;  %v134_v5 = vmax.f32 %v573_v26, %v120_v34 }
  0xb2   :  { %v133_v6 = vmax.f32 %v575_v27, %v118_v35  ;;  %v185_v19 = vsel %vm161_vm2, %v184_v3, %v180_v4 }
  0xb3   :  { %v218_v20 = vrot.slane %v134_v5, %v159_v53 }
  0xb4   :  { %v128_v36 = vpop.xlane.xlu1 %127  ;;  %v214_v21 = vrot.slane %v133_v6, %v154_v55 }
  0xb5   :  { %v126_v37 = vpop.xlane.xlu0 %125  ;;  %v138_v7 = vmax.f32 %v577_v28, %v128_v36 }
  0xb6   :  { %v137_v8 = vmax.f32 %v579_v29, %v126_v37  ;;  %v219_v37 = vsel %vm161_vm2, %v218_v20, %v214_v21 }
  0xb7   :  { %v237_v22 = vrot.slane %v138_v7, %v159_v53 }
  0xb8   :  { %v57_v38 = vpop.xlane.xlu1 %56  ;;  %v233_v23 = vrot.slane %v137_v8, %v154_v55  ;;  %v343_v55 = vld [vmem:[%s610_s2] sm:$0x3]  ;;  %s505_s2 = scalar_lea.vmem %s439_s28, 32 }
  0xb9   :  { %v49_v39 = vpop.xlane.xlu0 %48  ;;  %470 = vmatpush3.msk.msra.mxu1 %vm262_vm6, %v343_v55  ;;  %p506_p5 = scmp.ne.s32.totalorder %s439_s28, %s505_s2  ;;  %p511_p7 = scmp.lt.s32.totalorder %s505_s2, %s505_s2 }
  0xbb   :  { %p512_p8 = por %p511_p7, %p510_p6 }
  0xbc   :  { %v81_v40 = vpop.xlane.xlu1 %80 }
  0xbd   :  { %v73_v41 = vpop.xlane.xlu0 %72  ;;  %p513_p9 = pnand %p512_p8, %p506_p5 }
  0xc0   :  { %v106_v43 = vpop.xlane.xlu1 %105 }
  0xc1   :  { %v98_v44 = vpop.xlane.xlu0 %97  ;;  %v115_v61 = vadd.f32 %v106_v43, %v57_v38 }
  0xc2   :  { %v111_v62 = vadd.f32 %v98_v44, %v49_v39  ;;  %v238_v39 = vsel %vm161_vm2, %v237_v22, %v233_v23 }
  0xc3   :  { %v189_v10 = vrot.slane %v115_v61, %v166_v60 }
  0xc4   :  { %v130_v46 = vpop.xlane.xlu1 %129  ;;  %v167_v11 = vrot.slane %v111_v62, %v166_v60 }
  0xc5   :  { %v122_v47 = vpop.xlane.xlu0 %121  ;;  %v139_v12 = vmax.f32 %v81_v40, %v130_v46  ;;  %v190_v26 = vsel %vm168_vm3, %v189_v10, %v185_v19 }
  0xc6   :  { %v135_v13 = vmax.f32 %v73_v41, %v122_v47  ;;  %v169_v27 = vsel %vm168_vm3, %v167_v11, %v162_v18 }
  0xc7   :  { %v242_v28 = vrot.slane %v139_v12, %v166_v60 }
  0xc8   :  { %v59_v51 = vpop.xlane.xlu1 %58  ;;  %v223_v29 = vrot.slane %v135_v13, %v166_v60 }
  0xc9   :  { %v51_v52 = vpop.xlane.xlu0 %50  ;;  %v243_v43 = vsel %vm168_vm3, %v242_v28, %v238_v39 }
  0xca   :  { %v224_v44 = vsel %vm168_vm3, %v223_v29, %v219_v37 }
  0xcc   :  { %v83_v63 = vpop.xlane.xlu1 %82 }
  0xcd   :  { %v75_v0 = vpop.xlane.xlu0 %74 }
  0xd0   :  { %v108_v14 = vpop.xlane.xlu1 %107 }
  0xd1   :  { %v100_v15 = vpop.xlane.xlu0 %99  ;;  %v116_v16 = vadd.f32 %v108_v14, %v59_v51 }
  0xd2   :  { %v112_v17 = vadd.f32 %v100_v15, %v51_v52 }
  0xd3   :  { %v194_v24 = vrot.slane %v116_v16, %v173_v9 }
  0xd4   :  { %v174_v25 = vrot.slane %v112_v17, %v173_v9  ;;  %v132_v31 = vpop.xlane.xlu1 %131 }
  0xd5   :  { %v124_v32 = vpop.xlane.xlu0 %123  ;;  %v195_v33 = vsel %vm175_vm4, %v194_v24, %v190_v26  ;;  %v140_v35 = vmax.f32 %v83_v63, %v132_v31 }
  0xd6   :  { %v176_v34 = vsel %vm175_vm4, %v174_v25, %v169_v27  ;;  %v136_v36 = vmax.f32 %v75_v0, %v124_v32 }
  0xd7   :  { %v197_v38 = vsel %vm196_vm5, %v195_v33, %v176_v34  ;;  %v247_v41 = vrot.slane %v140_v35, %v173_v9 }
  0xd8   :  { %v199_v40 = vadd.f32 %v197_v38, %v141_v30  ;;  %v228_v42 = vrot.slane %v136_v36, %v173_v9 }
  0xd9   :  { %v248_v46 = vsel %vm175_vm4, %v247_v41, %v243_v43 }
  0xda   :  { %201 = vst.msk [vmem:[#allocation2] sm:$0x3] %vm33_vm0, %v199_v40  ;;  %v229_v47 = vsel %vm175_vm4, %v228_v42, %v224_v44 }
  0xdb   :  { %v249_v48 = vsel %vm196_vm5, %v248_v46, %v229_v47 }
  0xdc   :  { %v251_v49 = vmax.f32 %v202_v45, %v249_v48 }
  0xde   :  { %252 = vst.msk [vmem:[#allocation3] sm:$0x3] %vm33_vm0, %v251_v49 }
  0xe1   :  { %v256_v50 = vld [vmem:[#allocation2] sm:$0x3] }
  0xe2   :  { %v257_v52 = vmul.f32 0.00390625, %v256_v50 }
  0xe5   :  { %v258_v51 = vld [vmem:[#allocation3] sm:$0x3] }
  0xe6   :  { %v260_v53 = vrot.slane %v258_v51, 6 }
  0xe8   :  { %v263_v54 = vsel %vm262_vm6, %v257_v52, %v260_v53 }
  0xe9   :  { %467 = vmatmul.mubr.msk.f32.vlgmr.msra.gmra.mxu0 %vm268_vm7, %v263_v54 }
 0x1a9   :  { %v338_v56 = vpop.f32.mrf.mxu0 }
 0x1aa   :  { %v342_v57 = vmax.f32 %v338_v56, 0.0 }
 0x1ab   :  { %v468_v58 = vpop.f32.mrf.mxu0 }
 0x1ac   :  { %472 = vmatmul.mubr.msk.f32.vlgmr.msra.gmra.mxu1 %vm344_vm8, %v342_v57 }
 0x26c   :  { %v417_v59 = vpop.f32.mrf.mxu1 }
 0x26d   :  { %v422_v60 = vrot.slane %v417_v59, 2 }
 0x26e   :  { %v473_v61 = vpop.f32.mrf.mxu1 }
 0x26f   :  { %v424_v62 = vadd.f32 %v422_v60, %v417_v59 }
 0x271   :  { %v450_v63 = vmul.f32 -1.442695, %v424_v62 }
 0x273   :  { %481 = vpow2.f32 %v450_v63 }
 0x280   :  { %v482_v0 = vpop.eup %481 }
 0x281   :  { %v428_v1 = vadd.f32 1.0, %v482_v0 }
 0x283   :  { %483 = vrcp.f32 %v428_v1 }
 0x290   :  { %v484_v2 = vpop.eup %483 }
 0x291   :  { %431 = vst.msk [vmem:[#allocation7] sm:$0x3] %vm33_vm0, %v484_v2 }
 0x292   :  { %516 = shalt.err (!%p513_p9)
}
 0x293   :  { %441 = dma.vmem_to_hbm [thread:$0]  %s439_s28, 32, %s611_s3, [#allocation6]  }
 0x294   :  { %527 = dma.done.wait [#allocation6], 32  }
 0x295   :  { %528 = vsyncadd [#allocation6], 4294967264 }
 0x296   :  { %445 = vsyncpa [#allocation5], 1 }
 0x297   :  { %446 = vsyncpa [#allocation6], 1 }

</bundles_post_ra>
